<compile_context>
chip_gen: v7x
topology: tpu7x:2x2x1
jax: 0.10.0
libtpu: 0.0.40
codegen_flags: <defaults>
</compile_context>

<pallas_src>
import functools

import jax
import jax.numpy as jnp
from jax.experimental import pallas as pl
from jax.experimental.pallas import tpu as pltpu

_LANES = 128
_SUBLANES = 8


def _bce_smooth_kernel(logits_ref, targets_ref, partial_ref, *,
                       smoothing, block_rows, full_rows, rem_lanes,
                       needs_mask):
    x = logits_ref[...].astype(jnp.float32)
    t = targets_ref[...].astype(jnp.float32)

    # label smoothing: t <- t * (1 - s) + 0.5 * s
    t = t * (1.0 - smoothing) + 0.5 * smoothing

    # numerically stable BCE-with-logits (same formulation PyTorch uses):
    #   loss = max(x, 0) - x * t + log(1 + exp(-|x|))
    loss = jnp.maximum(x, 0.0) - x * t + jnp.log1p(jnp.exp(-jnp.abs(x)))

    if needs_mask:
        # Zero out padded elements exactly.  Row/lane mask avoids forming a
        # flat element index that could overflow int32 for huge inputs.
        i = pl.program_id(0)
        rows, lanes = loss.shape
        row_ids = (jax.lax.broadcasted_iota(jnp.int32, (rows, lanes), 0)
                   + i * block_rows)
        lane_ids = jax.lax.broadcasted_iota(jnp.int32, (rows, lanes), 1)
        valid = (row_ids < full_rows) | ((row_ids == full_rows)
                                         & (lane_ids < rem_lanes))
        loss = jnp.where(valid, loss, 0.0)

    # Per-block partial sums into an (8, 128) slab: elementwise vreg adds
    # over the leading axis only (no cross-lane XLU reduce in the hot loop).
    partial_ref[...] = loss.reshape(-1, _SUBLANES, _LANES).sum(axis=0)


def bce_with_logits_label_smoothing(logits, targets, smoothing=0.1,
                                    *, max_block_rows=4096):
    """Mean-reduced BCEWithLogitsLoss over label-smoothed targets."""
    assert logits.shape == targets.shape
    total = int(logits.size)
    assert total > 0

    def _round_up(v, m):
        return -(-v // m) * m

    flat_logits = logits.reshape(-1)
    flat_targets = targets.reshape(-1)

    rows = _round_up(total, _LANES) // _LANES
    # Balanced tiling: minimum number of <=max_block_rows blocks, then the
    # smallest 16-row-aligned block that covers the rows with that count.
    # Keeps blocks MiB-scale while minimizing padded DMA traffic; rows stay
    # a multiple of 16 so bf16 inputs pack into full (16, 128) vregs.
    num_blocks = -(-rows // max_block_rows)
    block_rows = _round_up(-(-rows // num_blocks), 16)
    rows_padded = num_blocks * block_rows
    padded_total = rows_padded * _LANES
    pad = padded_total - total
    if pad > 0:
        flat_logits = jnp.pad(flat_logits, (0, pad))
        flat_targets = jnp.pad(flat_targets, (0, pad))
    logits2 = flat_logits.reshape(rows_padded, _LANES)
    targets2 = flat_targets.reshape(rows_padded, _LANES)

    full_rows, rem_lanes = divmod(total, _LANES)

    kernel = functools.partial(
        _bce_smooth_kernel,
        smoothing=float(smoothing),
        block_rows=block_rows,
        full_rows=full_rows,
        rem_lanes=rem_lanes,
        needs_mask=(pad > 0),
    )

    partials = pl.pallas_call(
        kernel,
        out_shape=jax.ShapeDtypeStruct((num_blocks * _SUBLANES, _LANES),
                                       jnp.float32),
        grid_spec=pltpu.PrefetchScalarGridSpec(
            num_scalar_prefetch=0,
            grid=(num_blocks,),
            in_specs=[
                pl.BlockSpec((block_rows, _LANES), lambda i: (i, 0)),
                pl.BlockSpec((block_rows, _LANES), lambda i: (i, 0)),
            ],
            out_specs=pl.BlockSpec((_SUBLANES, _LANES), lambda i: (i, 0)),
        ),
        compiler_params=pltpu.CompilerParams(
            # Each grid step writes its own output block -> fully parallel,
            # so v7x can shard the grid across both TensorCores.
            dimension_semantics=("parallel",),
            # 2 inputs x 2 pipeline buffers x 2 MiB ~= 8 MiB; 32 MiB leaves
            # headroom and is safe on v5e / v6e / v7x.
            vmem_limit_bytes=32 * 1024 * 1024,
        ),
    )(logits2, targets2)

    # Tiny final reduction (num_blocks * 8 * 128 floats) + mean in XLA.
    return jnp.sum(partials) / total


def _reference(logits, targets, smoothing=0.1):
    x = logits.astype(jnp.float32)
    t = targets.astype(jnp.float32) * (1.0 - smoothing) + 0.5 * smoothing
    loss = jnp.maximum(x, 0.0) - x * t + jnp.log1p(jnp.exp(-jnp.abs(x)))
    return jnp.mean(loss)


if __name__ == "__main__":
    key = jax.random.PRNGKey(0)
    k1, k2, k3, k4, k5, k6 = jax.random.split(key, 6)

    # small multi-label classification shape: batch=16, classes=128 (aligned)
    logits = jax.random.normal(k1, (16, 128), dtype=jnp.float32) * 2.0
    targets = (jax.random.uniform(k2, (16, 128)) > 0.5).astype(jnp.float32)
    loss = jax.block_until_ready(
        bce_with_logits_label_smoothing(logits, targets, smoothing=0.1))
    ref = _reference(logits, targets, smoothing=0.1)
    assert jnp.allclose(loss, ref, rtol=1e-5, atol=1e-5), (loss, ref)

    # ragged shape exercising wrapper padding + in-kernel masking
    logits_r = jax.random.normal(k3, (7, 33), dtype=jnp.float32) * 2.0
    targets_r = (jax.random.uniform(k4, (7, 33)) > 0.5).astype(jnp.float32)
    loss_r = jax.block_until_ready(
        bce_with_logits_label_smoothing(logits_r, targets_r, smoothing=0.1))
    ref_r = _reference(logits_r, targets_r, smoothing=0.1)
    assert jnp.allclose(loss_r, ref_r, rtol=1e-5, atol=1e-5), (loss_r, ref_r)

    # bf16 inputs (kept narrow in HBM, upcast to f32 in-kernel)
    logits_b = (jax.random.normal(k5, (8, 200), dtype=jnp.float32) * 2.0
                ).astype(jnp.bfloat16)
    targets_b = (jax.random.uniform(k6, (8, 200)) > 0.5).astype(jnp.bfloat16)
    loss_b = jax.block_until_ready(
        bce_with_logits_label_smoothing(logits_b, targets_b, smoothing=0.1))
    ref_b = _reference(logits_b, targets_b, smoothing=0.1)
    assert jnp.allclose(loss_b, ref_b, rtol=1e-3, atol=1e-3), (loss_b, ref_b)

    print("KERNEL_OK")
</pallas_src>

<mosaic_0001>
module attributes {stable_mosaic.version = 11 : i64} {
  func.func @_bce_smooth_kernel(%arg0: i32, %arg1: memref<16x128xf32, #tpu.memory_space<vmem>>, %arg2: memref<16x128xf32, #tpu.memory_space<vmem>>, %arg3: memref<8x128xf32, #tpu.memory_space<vmem>>) attributes {dimension_semantics = [#tpu.dimension_semantics<parallel>], iteration_bounds = array<i64: 1>, scalar_prefetch = 0 : i64, scratch_operands = 0 : i64, tpu.core_type = #tpu.core_type<tc>, window_params = [{transform_indices = @transform_0, window_bounds = array<i64: 16, 128>}, {transform_indices = @transform_1, window_bounds = array<i64: 16, 128>}, {transform_indices = @transform_2, window_bounds = array<i64: 8, 128>}]} {
    %c0 = arith.constant 0 : index
    %c0_0 = arith.constant 0 : index
    %0 = vector.load %arg1[%c0, %c0_0] : memref<16x128xf32, #tpu.memory_space<vmem>>, vector<16x128xf32>
    %c0_1 = arith.constant 0 : index
    %c0_2 = arith.constant 0 : index
    %1 = vector.load %arg2[%c0_1, %c0_2] : memref<16x128xf32, #tpu.memory_space<vmem>>, vector<16x128xf32>
    %cst = arith.constant 0.899999976 : f32
    %2 = vector.broadcast %cst : f32 to vector<16x128xf32>
    %3 = arith.mulf %1, %2 : vector<16x128xf32>
    %cst_3 = arith.constant 5.000000e-02 : f32
    %4 = vector.broadcast %cst_3 : f32 to vector<16x128xf32>
    %5 = arith.addf %3, %4 : vector<16x128xf32>
    %cst_4 = arith.constant 0.000000e+00 : f32
    %6 = vector.broadcast %cst_4 : f32 to vector<16x128xf32>
    %7 = arith.maximumf %0, %6 : vector<16x128xf32>
    %8 = arith.mulf %0, %5 : vector<16x128xf32>
    %9 = arith.subf %7, %8 : vector<16x128xf32>
    %10 = math.absf %0 : vector<16x128xf32>
    %cst_5 = arith.constant 0.000000e+00 : f32
    %11 = vector.broadcast %cst_5 : f32 to vector<16x128xf32>
    %12 = arith.subf %11, %10 : vector<16x128xf32>
    %13 = math.exp %12 : vector<16x128xf32>
    %14 = math.log1p %13 : vector<16x128xf32>
    %15 = arith.addf %9, %14 : vector<16x128xf32>
    %16 = vector.shape_cast %15 : vector<16x128xf32> to vector<2x8x128xf32>
    %cst_6 = arith.constant dense<0.000000e+00> : vector<8x128xf32>
    %17 = vector.multi_reduction <add>, %16, %cst_6 [0] : vector<2x8x128xf32> to vector<8x128xf32>
    %c0_7 = arith.constant 0 : index
    %c0_8 = arith.constant 0 : index
    %18 = vector.load %arg3[%c0_7, %c0_8] : memref<8x128xf32, #tpu.memory_space<vmem>>, vector<8x128xf32>
    tpu.vector_store %arg3[%c0_7, %c0_8], %17 {strides = array<i32>} : memref<8x128xf32, #tpu.memory_space<vmem>>, vector<8x128xf32>,
    return
  }
  func.func @transform_0(%arg0: i32) -> (i32, i32) {
    %c0_i32 = arith.constant 0 : i32
    %c0_i32_0 = arith.constant 0 : i32
    return %arg0, %c0_i32 : i32, i32
  }
  func.func @transform_1(%arg0: i32) -> (i32, i32) {
    %c0_i32 = arith.constant 0 : i32
    %c0_i32_0 = arith.constant 0 : i32
    return %arg0, %c0_i32 : i32, i32
  }
  func.func @transform_2(%arg0: i32) -> (i32, i32) {
    %c0_i32 = arith.constant 0 : i32
    %c0_i32_0 = arith.constant 0 : i32
    return %arg0, %c0_i32 : i32, i32
  }
}

</mosaic_0001>

<bundles_post_ra>
// kernel: tpu_custom_call.1
= control target key start
LH: loop header
LB: loop body
LE: loop exit
PB: predicated region body
PF: predicated region fallthrough
CT: control target
= control target key end

     0   :  { %7 = vsyncpa [#allocation3], 0  ;;  %s241_s0 = inlined_call_operand.hbm [shape: f32[16,128], index: 0, kind: input, shape index: {}]   ;;  %s242_s1 = inlined_call_operand.hbm [shape: f32[16,128], index: 1, kind: input, shape index: {}]   ;;  %s243_s2 = inlined_call_operand.hbm [shape: f32[8,128], index: 2, kind: output, shape index: {}]  }
   0x1   :  { %8 = vsyncpa [#allocation6], 0 }
   0x2   :  { %9 = vsyncpa [#allocation4], 0  ;;  %s185_s9 = smov [#allocation2]   ;;  %s113_s13 = scalar_lea.hbm %s241_s0, 256 }
   0x3   :  { %s15_s10 = sshll.u32 %s185_s9, 4  ;;  %p114_p0 = scmp.ne.s32.totalorder %s241_s0, %s113_s13  ;;  %s16_s10 = int_to_ptr.vmem [resolvable:$true] %s15_s10 }
   0x4   :  { %p117_p1 = scmp.lt.u32.totalorder %s113_s13, %s241_s0 }
   0x6   :  { %p119_p2 = pnand %p117_p1, %p114_p0 }
   0x8   :  { %122 = shalt.err (!%p119_p2)
}
   0x9   :  { %s123_s18 = scalar_lea.vmem %s16_s10, 256  ;;  %p128_p4 = scmp.lt.s32.totalorder %s16_s10, %s16_s10 }
   0xa   :  { %p124_p3 = scmp.ne.s32.totalorder %s16_s10, %s123_s18  ;;  %p129_p5 = scmp.lt.s32.totalorder %s123_s18, %s123_s18 }
   0xc   :  { %p130_p6 = por %p129_p5, %p128_p4 }
   0xe   :  { %p131_p7 = pnand %p130_p6, %p124_p3 }
  0x10   :  { %134 = shalt.err (!%p131_p7)
}
  0x11   :  { %s186_s19 = smov 128   ;;  %s187_s20 = smov 8  }
  0x12   :  { %21 = dma.hbm_to_vmem [thread:$0]  %s241_s0, 256, %s16_s10, [#allocation3], %s186_s19, %s186_s19, %s187_s20  }
  0x13   :  { %s188_s23 = smov [#allocation5]   ;;  %s135_s27 = scalar_lea.hbm %s242_s1, 256 }
  0x14   :  { %s27_s24 = sshll.u32 %s188_s23, 4  ;;  %p136_p8 = scmp.ne.s32.totalorder %s242_s1, %s135_s27  ;;  %s28_s24 = int_to_ptr.vmem [resolvable:$true] %s27_s24 }
  0x15   :  { %p139_p9 = scmp.lt.u32.totalorder %s135_s27, %s242_s1 }
  0x17   :  { %p141_p10 = pnand %p139_p9, %p136_p8 }
  0x19   :  { %144 = shalt.err (!%p141_p10)
}
  0x1a   :  { %s145_s4 = scalar_lea.vmem %s28_s24, 256  ;;  %p150_p12 = scmp.lt.s32.totalorder %s28_s24, %s28_s24 }
  0x1b   :  { %p146_p11 = scmp.ne.s32.totalorder %s28_s24, %s145_s4  ;;  %p151_p13 = scmp.lt.s32.totalorder %s145_s4, %s145_s4 }
  0x1d   :  { %p152_p0 = por %p151_p13, %p150_p12 }
  0x1f   :  { %p153_p1 = pnand %p152_p0, %p146_p11 }
  0x21   :  { %156 = shalt.err (!%p153_p1)
}
  0x22   :  { %33 = dma.hbm_to_vmem [thread:$0]  %s242_s1, 256, %s28_s24, [#allocation6], %s186_s19, %s186_s19, %s187_s20  }
  0x23   :  { %179 = dma.done.wait [#allocation3], 256  }
  0x24   :  { %180 = vsyncadd [#allocation3], 4294967040 }
  0x25   :  { %181 = dma.done.wait [#allocation6], 256  }
  0x26   :  { %182 = vsyncadd [#allocation6], 4294967040  ;;  %v40_v0 = vld [vmem:[#allocation2] sm:$0xff]  ;;  %v41_v1 = vld [vmem:[#allocation2 + $0x8] sm:$0xff]  ;;  %s189_s1 = smov [#allocation7]  }
  0x27   :  { %v54_v2 = vand.u32 2147483647, %v40_v0  ;;  %v55_v3 = vand.u32 2147483647, %v41_v1  ;;  %v42_v8 = vld [vmem:[#allocation5] sm:$0xff]  ;;  %v43_v9 = vld [vmem:[#allocation5 + $0x8] sm:$0xff] }
  0x28   :  { %v44_v12 = vmul.f32 0.9, %v42_v8  ;;  %v45_v14 = vmul.f32 0.9, %v43_v9  ;;  %v48_v21 = vmax.f32 %v40_v0, 0.0  ;;  %v49_v25 = vmax.f32 %v41_v1, 0.0 }
  0x29   :  { %v56_v4 = vsub.f32 0.0, %v54_v2  ;;  %v57_v5 = vsub.f32 0.0, %v55_v3  ;;  %s90_s6 = sshll.u32 %s189_s1, 4  ;;  %s91_s6 = int_to_ptr.vmem [resolvable:$true] %s90_s6 }
  0x2a   :  { %v46_v17 = vadd.f32 0.05, %v44_v12  ;;  %v47_v19 = vadd.f32 0.05, %v45_v14  ;;  %s157_s7 = scalar_lea.vmem %s91_s6, 128  ;;  %p162_p3 = scmp.lt.s32.totalorder %s91_s6, %s91_s6 }
  0x2b   :  { %v58_v6 = vmul.f32 1.442695, %v56_v4  ;;  %v60_v7 = vmul.f32 1.442695, %v57_v5  ;;  %p158_p2 = scmp.ne.s32.totalorder %s91_s6, %s157_s7  ;;  %p163_p4 = scmp.lt.s32.totalorder %s157_s7, %s157_s7 }
  0x2c   :  { %v50_v22 = vmul.f32 %v46_v17, %v40_v0  ;;  %v51_v26 = vmul.f32 %v47_v19, %v41_v1 }
  0x2d   :  { %105 = vpow2.f32 %v58_v6  ;;  %p164_p5 = por %p163_p4, %p162_p3 }
  0x2e   :  { %107 = vpow2.f32 %v60_v7  ;;  %v52_v30 = vsub.f32 %v48_v21, %v50_v22  ;;  %v53_v33 = vsub.f32 %v49_v25, %v51_v26 }
  0x2f   :  { %p165_p6 = pnand %p164_p5, %p158_p2 }
  0x37   :  { %v106_v10 = vpop.eup %105 }
  0x38   :  { %v108_v11 = vpop.eup %107  ;;  %v62_v13 = vadd.f32 1.0, %v106_v10  ;;  %v65_v16 = vmul.f32 -0.5, %v106_v10  ;;  %v68_v23 = vand.u32 2147483647, %v106_v10 }
  0x39   :  { %v71_v15 = vadd.f32 1.0, %v108_v11  ;;  %v74_v18 = vmul.f32 -0.5, %v108_v11  ;;  %v77_v27 = vand.u32 2147483647, %v108_v11 }
  0x3a   :  { %109 = vlog2.f32 %v62_v13  ;;  %v66_v20 = vadd.f32 1.0, %v65_v16  ;;  %vm69_vm0 = vcmp.lt.f32.partialorder %v68_v23, 0.0004427343 }
  0x3b   :  { %111 = vlog2.f32 %v71_v15  ;;  %v75_v24 = vadd.f32 1.0, %v74_v18  ;;  %vm78_vm1 = vcmp.lt.f32.partialorder %v77_v27, 0.0004427343 }
  0x3c   :  { %v67_v28 = vmul.f32 %v106_v10, %v66_v20 }
  0x3d   :  { %v76_v31 = vmul.f32 %v108_v11, %v75_v24 }
  0x44   :  { %v110_v29 = vpop.eup %109 }
  0x45   :  { %v112_v32 = vpop.eup %111  ;;  %v64_v34 = vmul.f32 0.6931472, %v110_v29 }
  0x46   :  { %v73_v35 = vmul.f32 0.6931472, %v112_v32 }
  0x47   :  { %v70_v36 = vsel %vm69_vm0, %v67_v28, %v64_v34 }
  0x48   :  { %v79_v37 = vsel %vm78_vm1, %v76_v31, %v73_v35  ;;  %v80_v38 = vadd.f32 %v70_v36, %v52_v30 }
  0x49   :  { %v81_v39 = vadd.f32 %v79_v37, %v53_v33 }
  0x4b   :  { %v82_v40 = vadd.f32 %v81_v39, %v80_v38 }
  0x4d   :  { %83 = vst [vmem:[#allocation7] sm:$0xff] %v82_v40 }
  0x4e   :  { %168 = shalt.err (!%p165_p6)
}
  0x4f   :  { %s169_s10 = scalar_lea.hbm %s243_s2, 128 }
  0x50   :  { %p170_p7 = scmp.ne.s32.totalorder %s243_s2, %s169_s10  ;;  %p173_p8 = scmp.lt.u32.totalorder %s169_s10, %s243_s2 }
  0x52   :  { %p175_p9 = pnand %p173_p8, %p170_p7 }
  0x54   :  { %178 = shalt.err (!%p175_p9)
}
  0x55   :  { %93 = dma.vmem_to_hbm [thread:$0]  %s91_s6, 128, %s243_s2, [#allocation4]  }
  0x56   :  { %183 = dma.done.wait [#allocation4], 128  }
  0x57   :  { %184 = vsyncadd [#allocation4], 4294967168 }
  0x58   :  { %97 = vsyncpa [#allocation3], 1 }
  0x59   :  { %98 = vsyncpa [#allocation6], 1 }
  0x5a   :  { %99 = vsyncpa [#allocation4], 1 }

</bundles_post_ra>
